<compile_context>
chip_gen: v5e
topology: v5e:2x2
jax: 0.10.0
libtpu: 0.0.40
codegen_flags: <defaults>
</compile_context>

<pallas_src>
import math

import jax
import jax.numpy as jnp
from jax import lax
from jax.experimental import pallas as pl
from jax.experimental.pallas import tpu as pltpu

_SQRT_2_OVER_PI = math.sqrt(2.0 / math.pi)
_GELU_C1 = _SQRT_2_OVER_PI                # sqrt(2/pi)
_GELU_C2 = 0.044715 * _SQRT_2_OVER_PI     # 0.044715 * sqrt(2/pi)


def _bert_intermediate_kernel(x_ref, w_ref, b_ref, o_ref):
    # x_ref: (tm, H) activations; w_ref: (tn, H) weight in PyTorch (out, in)
    # layout; b_ref: (1, tn) bias; o_ref: (tm, tn) output.
    # Native-dtype tiles go straight to the MXU; accumulate in f32.
    y = lax.dot_general(
        x_ref[...], w_ref[...],
        dimension_numbers=(((1,), (1,)), ((), ())),   # contract K (trans_b)
        preferred_element_type=jnp.float32,
    )
    y = y + b_ref[...].astype(jnp.float32)

    # tanh-approx GELU with constants folded into the polynomial:
    #   0.5*y*(1+tanh(c*(y+0.044715*y^3)))
    #     == y*(0.5 + 0.5*tanh(y*(c + 0.044715*c*y^2)))
    y2 = y * y
    t = jnp.tanh(y * (_GELU_C1 + _GELU_C2 * y2))      # EUP
    o_ref[...] = (y * (0.5 + 0.5 * t)).astype(o_ref.dtype)


def _vmem_capacity_bytes():
    """Per-core VMEM capacity; conservative fallback if the query fails."""
    try:
        info = pltpu.get_tpu_info()
        cap = getattr(info, "vmem_capacity_bytes", None)
        if cap:
            return int(cap)
    except Exception:
        pass
    return 64 * 1024 * 1024   # v7x per-TC size: safe everywhere


def _divisor_candidates(dim, align, cap):
    """Divisors of `dim` that are multiples of `align` (plus `dim` itself),
    largest first."""
    cands = {dim}
    d = align
    limit = min(dim, cap)
    while d <= limit:
        if dim % d == 0:
            cands.add(d)
        d += align
    return sorted(cands, reverse=True)


def _choose_tiles(M, H, I, x_bytes, w_bytes, o_bytes, budget_bytes):
    """Pick (tm, tn): maximize tn first (weight residency + lane-dense output
    stores), then tm, under a pipelined-VMEM working-set budget."""

    def working_set(tm, tn):
        w_bufs = 1 if tn == I else 2          # resident weight: single buffer
        return (2 * tm * H * x_bytes          # activation tile, double-buffered
                + w_bufs * tn * H * w_bytes   # weight panel
                + w_bufs * tn * 4             # bias (negligible)
                + 2 * tm * tn * o_bytes       # output tile, double-buffered
                + 5 * tm * tn * 4)            # f32 epilogue temporaries

    tm_cands = _divisor_candidates(M, 8, cap=4096)
    tn_cands = _divisor_candidates(I, 128, cap=32768)

    for tn in tn_cands:                       # largest tn first (tn == I if it fits)
        fitting = [tm for tm in tm_cands if working_set(tm, tn) <= budget_bytes]
        if not fitting:
            continue
        best = fitting[0]
        # Mild preferences (never shrink more than 2x): multiples of 256 fill
        # the v6e/v7x MXU, and an even number of M-steps balances megacore.
        good = [t for t in fitting if 2 * t >= best]

        def score(t):
            steps = M // t
            return (t % 256 == 0, steps == 1 or steps % 2 == 0, t)

        return max(good, key=score), tn
    return tm_cands[-1], tn_cands[-1]         # smallest legal tiles as fallback


def bert_intermediate(hidden_states, weight, bias, *, tm=None, tn=None,
                      cast_to_bf16=False):
    """hidden_states: (B, S, H); weight: (I, H) [PyTorch nn.Linear layout];
    bias: (I,). Returns GELU(x @ W.T + b) with shape (B, S, I)."""
    B, S, H = hidden_states.shape
    I, H_w = weight.shape
    assert H_w == H
    out_dtype = hidden_states.dtype

    if cast_to_bf16:   # optional faster MXU feed; accumulation stays f32
        hidden_states = hidden_states.astype(jnp.bfloat16)
        weight = weight.astype(jnp.bfloat16)

    M = B * S
    x2d = hidden_states.reshape(M, H)
    b2d = bias.reshape(1, I)

    # Pad ragged M so a sublane-aligned (multiple-of-8) tile always exists.
    M_pad = (-M) % 8
    if M_pad:
        x2d = jnp.pad(x2d, ((0, M_pad), (0, 0)))
    Mp = M + M_pad

    capacity = _vmem_capacity_bytes()
    budget = max(32 * 1024 * 1024, min(int(0.58 * capacity), 96 * 1024 * 1024))
    vmem_limit = max(48 * 1024 * 1024, min(int(0.78 * capacity), 110 * 1024 * 1024))

    auto_tm, auto_tn = _choose_tiles(
        Mp, H, I,
        x2d.dtype.itemsize, weight.dtype.itemsize, jnp.dtype(out_dtype).itemsize,
        budget)
    tm = tm or auto_tm
    tn = tn or auto_tn
    assert Mp % tm == 0 and I % tn == 0, (Mp, tm, I, tn)

    cost = pl.CostEstimate(
        flops=2 * Mp * H * I,
        transcendentals=Mp * I,
        bytes_accessed=(Mp * H * x2d.dtype.itemsize
                        + I * H * weight.dtype.itemsize
                        + I * bias.dtype.itemsize
                        + Mp * I * jnp.dtype(out_dtype).itemsize),
    )
    compiler_params = pltpu.CompilerParams(
        dimension_semantics=("parallel",) if tn == I else ("parallel", "parallel"),
        vmem_limit_bytes=vmem_limit,
    )

    def build(single_buffer_invariants):
        if tn == I:
            # Weight panel fully VMEM-resident: 1-D grid over M; the invariant
            # weight/bias are single-buffered (no wasted second copy).
            mode = ({"pipeline_mode": pl.Buffered(1)}
                    if single_buffer_invariants else {})
            grid = (Mp // tm,)
            in_specs = [
                pl.BlockSpec((tm, H), lambda i: (i, 0)),          # activations
                pl.BlockSpec((I, H), lambda i: (0, 0), **mode),   # resident weight
                pl.BlockSpec((1, I), lambda i: (0, 0), **mode),   # resident bias
            ]
            out_specs = pl.BlockSpec((tm, I), lambda i: (i, 0))
        else:
            # Weight streamed: M innermost so each (tn, H) panel stays resident
            # across the whole M sweep; only x is re-read I//tn times.
            grid = (I // tn, Mp // tm)
            in_specs = [
                pl.BlockSpec((tm, H), lambda j, i: (i, 0)),
                pl.BlockSpec((tn, H), lambda j, i: (j, 0)),
                pl.BlockSpec((1, tn), lambda j, i: (0, j)),
            ]
            out_specs = pl.BlockSpec((tm, tn), lambda j, i: (i, j))

        return pl.pallas_call(
            _bert_intermediate_kernel,
            out_shape=jax.ShapeDtypeStruct((Mp, I), out_dtype),
            grid_spec=pltpu.PrefetchScalarGridSpec(
                num_scalar_prefetch=0,
                grid=grid,
                in_specs=in_specs,
                out_specs=out_specs,
            ),
            compiler_params=compiler_params,
            cost_estimate=cost,
        )

    try:
        out2d = build(single_buffer_invariants=(tn == I))(x2d, weight, b2d)
    except Exception:
        # Fallback if Buffered(1) is unsupported on this Pallas version.
        out2d = build(single_buffer_invariants=False)(x2d, weight, b2d)

    if M_pad:
        out2d = out2d[:M]
    return out2d.reshape(B, S, I)


def _reference(hidden_states, weight, bias):
    y = jnp.einsum("bsh,ih->bsi", hidden_states, weight) + bias
    c = math.sqrt(2.0 / math.pi)
    return 0.5 * y * (1.0 + jnp.tanh(c * (y + 0.044715 * y**3)))


if __name__ == "__main__":
    # Small, forward-consistent shapes: batch=2, seq=8, hidden=32, intermediate=128.
    B, S, H, I = 2, 8, 32, 128

    key = jax.random.PRNGKey(0)
    kx, kw, kb = jax.random.split(key, 3)
    hidden_states = jax.random.normal(kx, (B, S, H), dtype=jnp.float32)
    # PyTorch nn.Linear layout: weight (out, in), bias (out,)
    weight = jax.random.normal(kw, (I, H), dtype=jnp.float32) * 0.02
    bias = jax.random.normal(kb, (I,), dtype=jnp.float32) * 0.02

    out = bert_intermediate(hidden_states, weight, bias)
    out = jax.block_until_ready(out)

    ref = _reference(hidden_states, weight, bias)
    assert out.shape == (B, S, I)
    assert jnp.allclose(out, ref, atol=1e-5, rtol=1e-5)

    print("KERNEL_OK")
</pallas_src>

<mosaic_0001>
module attributes {stable_mosaic.version = 11 : i64} {
  func.func @_bert_intermediate_kernel(%arg0: i32, %arg1: memref<16x32xf32, #tpu.memory_space<vmem>>, %arg2: memref<128x32xf32, #tpu.memory_space<vmem>>, %arg3: memref<1x128xf32, #tpu.memory_space<vmem>>, %arg4: memref<16x128xf32, #tpu.memory_space<vmem>>) attributes {dimension_semantics = [#tpu.dimension_semantics<parallel>], iteration_bounds = array<i64: 1>, scalar_prefetch = 0 : i64, scratch_operands = 0 : i64, tpu.core_type = #tpu.core_type<tc>, window_params = [{transform_indices = @transform_0, window_bounds = array<i64: 16, 32>}, {pipeline_mode = #tpu.pipeline_mode<synchronous>, transform_indices = @transform_1, window_bounds = array<i64: 128, 32>}, {pipeline_mode = #tpu.pipeline_mode<synchronous>, transform_indices = @transform_2, window_bounds = array<i64: 1, 128>}, {transform_indices = @transform_3, window_bounds = array<i64: 16, 128>}]} {
    %c0 = arith.constant 0 : index
    %c0_0 = arith.constant 0 : index
    %0 = vector.load %arg1[%c0, %c0_0] : memref<16x32xf32, #tpu.memory_space<vmem>>, vector<16x32xf32>
    %c0_1 = arith.constant 0 : index
    %c0_2 = arith.constant 0 : index
    %1 = vector.load %arg2[%c0_1, %c0_2] : memref<128x32xf32, #tpu.memory_space<vmem>>, vector<128x32xf32>
    %cst = arith.constant dense<0.000000e+00> : vector<16x128xf32>
    %2 = tpu.matmul %0, %1, %cst {dimension_numbers = #tpu.dot_dimension_numbers<[1], [1], [0], [0], [0, 0, 1, 0], [], []>} : vector<16x32xf32>, vector<128x32xf32>, vector<16x128xf32> -> vector<16x128xf32>
    %c0_3 = arith.constant 0 : index
    %c0_4 = arith.constant 0 : index
    %3 = vector.load %arg3[%c0_3, %c0_4] : memref<1x128xf32, #tpu.memory_space<vmem>>, vector<1x128xf32>
    %4 = vector.broadcast %3 : vector<1x128xf32> to vector<16x128xf32>
    %5 = arith.addf %2, %4 : vector<16x128xf32>
    %6 = arith.mulf %5, %5 : vector<16x128xf32>
    %cst_5 = arith.constant 0.0356774069 : f32
    %7 = vector.broadcast %cst_5 : f32 to vector<16x128xf32>
    %8 = arith.mulf %7, %6 : vector<16x128xf32>
    %cst_6 = arith.constant 0.797884583 : f32
    %9 = vector.broadcast %cst_6 : f32 to vector<16x128xf32>
    %10 = arith.addf %9, %8 : vector<16x128xf32>
    %11 = arith.mulf %5, %10 : vector<16x128xf32>
    %12 = math.tanh %11 : vector<16x128xf32>
    %cst_7 = arith.constant 5.000000e-01 : f32
    %13 = vector.broadcast %cst_7 : f32 to vector<16x128xf32>
    %14 = arith.mulf %13, %12 : vector<16x128xf32>
    %cst_8 = arith.constant 5.000000e-01 : f32
    %15 = vector.broadcast %cst_8 : f32 to vector<16x128xf32>
    %16 = arith.addf %15, %14 : vector<16x128xf32>
    %17 = arith.mulf %5, %16 : vector<16x128xf32>
    %c0_9 = arith.constant 0 : index
    %c0_10 = arith.constant 0 : index
    %18 = vector.load %arg4[%c0_9, %c0_10] : memref<16x128xf32, #tpu.memory_space<vmem>>, vector<16x128xf32>
    tpu.vector_store %arg4[%c0_9, %c0_10], %17 {strides = array<i32>} : memref<16x128xf32, #tpu.memory_space<vmem>>, vector<16x128xf32>,
    return
  }
  func.func @transform_0(%arg0: i32) -> (i32, i32) {
    %c0_i32 = arith.constant 0 : i32
    %c0_i32_0 = arith.constant 0 : i32
    return %arg0, %c0_i32 : i32, i32
  }
  func.func @transform_1(%arg0: i32) -> (i32, i32) {
    %c0_i32 = arith.constant 0 : i32
    %c0_i32_0 = arith.constant 0 : i32
    %c0_i32_1 = arith.constant 0 : i32
    return %c0_i32, %c0_i32_0 : i32, i32
  }
  func.func @transform_2(%arg0: i32) -> (i32, i32) {
    %c0_i32 = arith.constant 0 : i32
    %c0_i32_0 = arith.constant 0 : i32
    %c0_i32_1 = arith.constant 0 : i32
    return %c0_i32, %c0_i32_0 : i32, i32
  }
  func.func @transform_3(%arg0: i32) -> (i32, i32) {
    %c0_i32 = arith.constant 0 : i32
    %c0_i32_0 = arith.constant 0 : i32
    return %arg0, %c0_i32 : i32, i32
  }
}

module attributes {stable_mosaic.version = 11 : i64} {
  func.func @_bert_intermediate_kernel(%arg0: i32, %arg1: memref<16x32xf32, #tpu.memory_space<vmem>>, %arg2: memref<128x32xf32, #tpu.memory_space<vmem>>, %arg3: memref<1x128xf32, #tpu.memory_space<vmem>>, %arg4: memref<16x128xf32, #tpu.memory_space<vmem>>) attributes {dimension_semantics = [#tpu.dimension_semantics<parallel>], iteration_bounds = array<i64: 1>, scalar_prefetch = 0 : i64, scratch_operands = 0 : i64, tpu.core_type = #tpu.core_type<tc>, window_params = [{transform_indices = @transform_0, window_bounds = array<i64: 16, 32>}, {pipeline_mode = #tpu.pipeline_mode<synchronous>, transform_indices = @transform_1, window_bounds = array<i64: 128, 32>}, {pipeline_mode = #tpu.pipeline_mode<synchronous>, transform_indices = @transform_2, window_bounds = array<i64: 1, 128>}, {transform_indices = @transform_3, window_bounds = array<i64: 16, 128>}]} {
    %c0 = arith.constant 0 : index
    %c0_0 = arith.constant 0 : index
    %0 = vector.load %arg1[%c0, %c0_0] : memref<16x32xf32, #tpu.memory_space<vmem>>, vector<16x32xf32>
    %c0_1 = arith.constant 0 : index
    %c0_2 = arith.constant 0 : index
    %1 = vector.load %arg2[%c0_1, %c0_2] : memref<128x32xf32, #tpu.memory_space<vmem>>, vector<128x32xf32>
    %cst = arith.constant dense<0.000000e+00> : vector<16x128xf32>
    %2 = tpu.matmul %0, %1, %cst {dimension_numbers = #tpu.dot_dimension_numbers<[1], [1], [0], [0], [0, 0, 1, 0], [], []>} : vector<16x32xf32>, vector<128x32xf32>, vector<16x128xf32> -> vector<16x128xf32>
    %c0_3 = arith.constant 0 : index
    %c0_4 = arith.constant 0 : index
    %3 = vector.load %arg3[%c0_3, %c0_4] : memref<1x128xf32, #tpu.memory_space<vmem>>, vector<1x128xf32>
    %4 = vector.broadcast %3 : vector<1x128xf32> to vector<16x128xf32>
    %5 = arith.addf %2, %4 : vector<16x128xf32>
    %6 = arith.mulf %5, %5 : vector<16x128xf32>
    %cst_5 = arith.constant 0.0356774069 : f32
    %7 = vector.broadcast %cst_5 : f32 to vector<16x128xf32>
    %8 = arith.mulf %7, %6 : vector<16x128xf32>
    %cst_6 = arith.constant 0.797884583 : f32
    %9 = vector.broadcast %cst_6 : f32 to vector<16x128xf32>
    %10 = arith.addf %9, %8 : vector<16x128xf32>
    %11 = arith.mulf %5, %10 : vector<16x128xf32>
    %12 = math.tanh %11 : vector<16x128xf32>
    %cst_7 = arith.constant 5.000000e-01 : f32
    %13 = vector.broadcast %cst_7 : f32 to vector<16x128xf32>
    %14 = arith.mulf %13, %12 : vector<16x128xf32>
    %cst_8 = arith.constant 5.000000e-01 : f32
    %15 = vector.broadcast %cst_8 : f32 to vector<16x128xf32>
    %16 = arith.addf %15, %14 : vector<16x128xf32>
    %17 = arith.mulf %5, %16 : vector<16x128xf32>
    %c0_9 = arith.constant 0 : index
    %c0_10 = arith.constant 0 : index
    %18 = vector.load %arg4[%c0_9, %c0_10] : memref<16x128xf32, #tpu.memory_space<vmem>>, vector<16x128xf32>
    tpu.vector_store %arg4[%c0_9, %c0_10], %17 {strides = array<i32>} : memref<16x128xf32, #tpu.memory_space<vmem>>, vector<16x128xf32>,
    return
  }
  func.func @transform_0(%arg0: i32) -> (i32, i32) {
    %c0_i32 = arith.constant 0 : i32
    %c0_i32_0 = arith.constant 0 : i32
    return %arg0, %c0_i32 : i32, i32
  }
  func.func @transform_1(%arg0: i32) -> (i32, i32) {
    %c0_i32 = arith.constant 0 : i32
    %c0_i32_0 = arith.constant 0 : i32
    %c0_i32_1 = arith.constant 0 : i32
    return %c0_i32, %c0_i32_0 : i32, i32
  }
  func.func @transform_2(%arg0: i32) -> (i32, i32) {
    %c0_i32 = arith.constant 0 : i32
    %c0_i32_0 = arith.constant 0 : i32
    %c0_i32_1 = arith.constant 0 : i32
    return %c0_i32, %c0_i32_0 : i32, i32
  }
  func.func @transform_3(%arg0: i32) -> (i32, i32) {
    %c0_i32 = arith.constant 0 : i32
    %c0_i32_0 = arith.constant 0 : i32
    return %arg0, %c0_i32 : i32, i32
  }
}

</mosaic_0001>

<bundles_post_ra>
// kernel: tpu_custom_call.1
= control target key start
LH: loop header
LB: loop body
LE: loop exit
PB: predicated region body
PF: predicated region fallthrough
CT: control target
= control target key end

     0   :  { %vm37_vm0 = vcmask 261120   ;;  %s336_s0 = inlined_call_operand.vmem [shape: f32[16,32], index: 0, kind: input, shape index: {}]   ;;  %s337_s1 = inlined_call_operand.vmem [shape: f32[128,32], index: 1, kind: input, shape index: {}]   ;;  %s338_s2 = inlined_call_operand.vmem [shape: f32[1,128], index: 2, kind: input, shape index: {}]   ;;  %s339_s3 = inlined_call_operand.hbm [shape: f32[16,128], index: 3, kind: output, shape index: {}]  }
   0x1   :  { %v32_v0 = vld [vmem:[%s337_s1 + $0x78] sm:$0xff]  ;;  %v31_v1 = vld [vmem:[%s337_s1 + $0x70] sm:$0xff] }
   0x2   :  { %151 = vmatpush.xpose.msk.msra.mxu0 %vm37_vm0, %v32_v0  ;;  %169 = vmatpush.xpose.msk.msra.mxu1 %vm37_vm0, %v32_v0 }
   0x3   :  { %8 = vsyncpa [#allocation3], 0  ;;  %v30_v2 = vld [vmem:[%s337_s1 + $0x68] sm:$0xff]  ;;  %v29_v3 = vld [vmem:[%s337_s1 + $0x60] sm:$0xff]  ;;  %s139_s24 = sshll.u32 %s339_s3, 4  ;;  %s220_s25 = smov 128   ;;  %s140_s24 = int_to_ptr.hbm [resolvable:$true] %s139_s24 }
   0x4   :  { %v28_v4 = vld [vmem:[%s337_s1 + $0x58] sm:$0xff]  ;;  %v27_v5 = vld [vmem:[%s337_s1 + $0x50] sm:$0xff]  ;;  %v26_v6 = vld [vmem:[%s337_s1 + $0x48] sm:$0xff]  ;;  %s221_s26 = smov 8  }
   0x5   :  { %v25_v7 = vld [vmem:[%s337_s1 + $0x40] sm:$0xff]  ;;  %v24_v8 = vld [vmem:[%s337_s1 + $0x38] sm:$0xff]  ;;  %v23_v9 = vld [vmem:[%s337_s1 + $0x30] sm:$0xff] }
   0x6   :  { %152 = vmatpush.xpose.msk.msra.mxu0 %vm37_vm0, %v31_v1  ;;  %170 = vmatpush.xpose.msk.msra.mxu1 %vm37_vm0, %v31_v1  ;;  %v22_v10 = vld [vmem:[%s337_s1 + $0x28] sm:$0xff]  ;;  %v21_v11 = vld [vmem:[%s337_s1 + $0x20] sm:$0xff]  ;;  %v20_v12 = vld [vmem:[%s337_s1 + $0x18] sm:$0xff] }
   0x7   :  { %v19_v13 = vld [vmem:[%s337_s1 + $0x10] sm:$0xff]  ;;  %v18_v14 = vld [vmem:[%s337_s1 + $0x8] sm:$0xff]  ;;  %v17_v15 = vld [vmem:[%s337_s1] sm:$0xff] }
   0x8   :  { %v15_v16 = vld [vmem:[%s336_s0] sm:$0xff]  ;;  %v16_v17 = vld [vmem:[%s336_s0 + $0x8] sm:$0xff]  ;;  %s219_s0 = smov [#allocation2]  }
   0x9   :  { %v188_v18 = vld [vmem:[%s338_s2] ss:$0 sm:$0xff]  ;;  %s137_s1 = sshll.u32 %s219_s0, 4  ;;  %s138_s1 = int_to_ptr.vmem [resolvable:$true] %s137_s1 }
   0xa   :  { %153 = vmatpush.xpose.msk.msra.mxu0 %vm37_vm0, %v30_v2  ;;  %171 = vmatpush.xpose.msk.msra.mxu1 %vm37_vm0, %v30_v2 }
   0xe   :  { %154 = vmatpush.xpose.msk.msra.mxu0 %vm37_vm0, %v29_v3  ;;  %172 = vmatpush.xpose.msk.msra.mxu1 %vm37_vm0, %v29_v3 }
  0x12   :  { %155 = vmatpush.xpose.msk.msra.mxu0 %vm37_vm0, %v28_v4  ;;  %173 = vmatpush.xpose.msk.msra.mxu1 %vm37_vm0, %v28_v4 }
  0x16   :  { %156 = vmatpush.xpose.msk.msra.mxu0 %vm37_vm0, %v27_v5  ;;  %174 = vmatpush.xpose.msk.msra.mxu1 %vm37_vm0, %v27_v5 }
  0x1a   :  { %157 = vmatpush.xpose.msk.msra.mxu0 %vm37_vm0, %v26_v6  ;;  %175 = vmatpush.xpose.msk.msra.mxu1 %vm37_vm0, %v26_v6 }
  0x1e   :  { %158 = vmatpush.xpose.msk.msra.mxu0 %vm37_vm0, %v25_v7  ;;  %176 = vmatpush.xpose.msk.msra.mxu1 %vm37_vm0, %v25_v7 }
  0x22   :  { %159 = vmatpush.xpose.msk.msra.mxu0 %vm37_vm0, %v24_v8  ;;  %177 = vmatpush.xpose.msk.msra.mxu1 %vm37_vm0, %v24_v8 }
  0x26   :  { %160 = vmatpush.xpose.msk.msra.mxu0 %vm37_vm0, %v23_v9  ;;  %178 = vmatpush.xpose.msk.msra.mxu1 %vm37_vm0, %v23_v9 }
  0x2a   :  { %161 = vmatpush.xpose.msk.msra.mxu0 %vm37_vm0, %v22_v10  ;;  %179 = vmatpush.xpose.msk.msra.mxu1 %vm37_vm0, %v22_v10 }
  0x2e   :  { %162 = vmatpush.xpose.msk.msra.mxu0 %vm37_vm0, %v21_v11  ;;  %180 = vmatpush.xpose.msk.msra.mxu1 %vm37_vm0, %v21_v11 }
  0x32   :  { %163 = vmatpush.xpose.msk.msra.mxu0 %vm37_vm0, %v20_v12  ;;  %181 = vmatpush.xpose.msk.msra.mxu1 %vm37_vm0, %v20_v12 }
  0x36   :  { %164 = vmatpush.xpose.msk.msra.mxu0 %vm37_vm0, %v19_v13  ;;  %182 = vmatpush.xpose.msk.msra.mxu1 %vm37_vm0, %v19_v13 }
  0x3a   :  { %165 = vmatpush.xpose.msk.msra.mxu0 %vm37_vm0, %v18_v14  ;;  %183 = vmatpush.xpose.msk.msra.mxu1 %vm37_vm0, %v18_v14 }
  0x3e   :  { %166 = vmatpush.xpose.msk.msra.mxu0 %vm37_vm0, %v17_v15  ;;  %184 = vmatpush.xpose.msk.msra.mxu1 %vm37_vm0, %v17_v15 }
  0x41   :  { %167 = vmatmul.msk.f32.vlgmr.msra.gmra.mxu0 %vm37_vm0, %v15_v16  ;;  %168 = vmatmul.msk.f32.vlgmr.msra.gmra.mxu1 %vm37_vm0, %v16_v17 }
  0xbe   :  { %v109_v19 = vpop.f32.mrf.mxu0  ;;  %v112_v20 = vpop.f32.mrf.mxu1 }
  0xbf   :  { %v110_v21 = vadd.f32 %v188_v18, %v109_v19  ;;  %v113_v22 = vadd.f32 %v188_v18, %v112_v20 }
  0xc1   :  { %v115_v23 = vmul.f32 %v110_v21, %v110_v21  ;;  %v116_v24 = vmul.f32 %v113_v22, %v113_v22 }
  0xc3   :  { %v117_v25 = vmul.f32 0.035677407, %v115_v23  ;;  %v118_v26 = vmul.f32 0.035677407, %v116_v24 }
  0xc5   :  { %v119_v27 = vadd.f32 0.7978846, %v117_v25  ;;  %v120_v28 = vadd.f32 0.7978846, %v118_v26 }
  0xc7   :  { %v121_v29 = vmul.f32 %v119_v27, %v110_v21  ;;  %v122_v30 = vmul.f32 %v120_v28, %v113_v22 }
  0xc9   :  { %189 = vtanh.f32 %v121_v29 }
  0xca   :  { %191 = vtanh.f32 %v122_v30 }
  0xcf   :  { %v190_v31 = vpop.eup %189 }
  0xd0   :  { %v192_v32 = vpop.eup %191  ;;  %v125_v33 = vmul.f32 0.5, %v190_v31 }
  0xd1   :  { %v126_v34 = vmul.f32 0.5, %v192_v32 }
  0xd2   :  { %v127_v35 = vadd.f32 0.5, %v125_v33 }
  0xd3   :  { %v128_v36 = vadd.f32 0.5, %v126_v34 }
  0xd4   :  { %v129_v37 = vmul.f32 %v127_v35, %v110_v21 }
  0xd5   :  { %v130_v38 = vmul.f32 %v128_v36, %v113_v22 }
  0xd6   :  { %131 = vst [vmem:[#allocation2] sm:$0xff] %v129_v37 }
  0xd7   :  { %132 = vst [vmem:[#allocation2 + $0x8] sm:$0xff] %v130_v38 }
  0xd8   :  { %145 = dma.vmem_to_hbm [thread:$0]  %s138_s1, 256, %s140_s24, [#allocation3], %s220_s25, %s220_s25, %s221_s26  }
  0xd9   :  { %217 = dma.done.wait [#allocation3], 256  }
  0xda   :  { %218 = vsyncadd [#allocation3], 4294967040 }
  0xdb   :  { %150 = vsyncpa [#allocation3], 1 }

// kernel: tpu_custom_call.1
= control target key start
LH: loop header
LB: loop body
LE: loop exit
PB: predicated region body
PF: predicated region fallthrough
CT: control target
= control target key end

     0   :  { %vm37_vm0 = vcmask 261120   ;;  %s336_s0 = inlined_call_operand.vmem [shape: f32[16,32], index: 0, kind: input, shape index: {}]   ;;  %s337_s1 = inlined_call_operand.vmem [shape: f32[128,32], index: 1, kind: input, shape index: {}]   ;;  %s338_s2 = inlined_call_operand.vmem [shape: f32[1,128], index: 2, kind: input, shape index: {}]   ;;  %s339_s3 = inlined_call_operand.hbm [shape: f32[16,128], index: 3, kind: output, shape index: {}]  }
   0x1   :  { %v32_v0 = vld [vmem:[%s337_s1 + $0x78] sm:$0xff]  ;;  %v31_v1 = vld [vmem:[%s337_s1 + $0x70] sm:$0xff] }
   0x2   :  { %151 = vmatpush.xpose.msk.msra.mxu0 %vm37_vm0, %v32_v0  ;;  %169 = vmatpush.xpose.msk.msra.mxu1 %vm37_vm0, %v32_v0 }
   0x3   :  { %8 = vsyncpa [#allocation3], 0  ;;  %v30_v2 = vld [vmem:[%s337_s1 + $0x68] sm:$0xff]  ;;  %v29_v3 = vld [vmem:[%s337_s1 + $0x60] sm:$0xff]  ;;  %s139_s24 = sshll.u32 %s339_s3, 4  ;;  %s220_s25 = smov 128   ;;  %s140_s24 = int_to_ptr.hbm [resolvable:$true] %s139_s24 }
   0x4   :  { %v28_v4 = vld [vmem:[%s337_s1 + $0x58] sm:$0xff]  ;;  %v27_v5 = vld [vmem:[%s337_s1 + $0x50] sm:$0xff]  ;;  %v26_v6 = vld [vmem:[%s337_s1 + $0x48] sm:$0xff]  ;;  %s221_s26 = smov 8  }
   0x5   :  { %v25_v7 = vld [vmem:[%s337_s1 + $0x40] sm:$0xff]  ;;  %v24_v8 = vld [vmem:[%s337_s1 + $0x38] sm:$0xff]  ;;  %v23_v9 = vld [vmem:[%s337_s1 + $0x30] sm:$0xff] }
   0x6   :  { %152 = vmatpush.xpose.msk.msra.mxu0 %vm37_vm0, %v31_v1  ;;  %170 = vmatpush.xpose.msk.msra.mxu1 %vm37_vm0, %v31_v1  ;;  %v22_v10 = vld [vmem:[%s337_s1 + $0x28] sm:$0xff]  ;;  %v21_v11 = vld [vmem:[%s337_s1 + $0x20] sm:$0xff]  ;;  %v20_v12 = vld [vmem:[%s337_s1 + $0x18] sm:$0xff] }
   0x7   :  { %v19_v13 = vld [vmem:[%s337_s1 + $0x10] sm:$0xff]  ;;  %v18_v14 = vld [vmem:[%s337_s1 + $0x8] sm:$0xff]  ;;  %v17_v15 = vld [vmem:[%s337_s1] sm:$0xff] }
   0x8   :  { %v15_v16 = vld [vmem:[%s336_s0] sm:$0xff]  ;;  %v16_v17 = vld [vmem:[%s336_s0 + $0x8] sm:$0xff]  ;;  %s219_s0 = smov [#allocation2]  }
   0x9   :  { %v188_v18 = vld [vmem:[%s338_s2] ss:$0 sm:$0xff]  ;;  %s137_s1 = sshll.u32 %s219_s0, 4  ;;  %s138_s1 = int_to_ptr.vmem [resolvable:$true] %s137_s1 }
   0xa   :  { %153 = vmatpush.xpose.msk.msra.mxu0 %vm37_vm0, %v30_v2  ;;  %171 = vmatpush.xpose.msk.msra.mxu1 %vm37_vm0, %v30_v2 }
   0xe   :  { %154 = vmatpush.xpose.msk.msra.mxu0 %vm37_vm0, %v29_v3  ;;  %172 = vmatpush.xpose.msk.msra.mxu1 %vm37_vm0, %v29_v3 }
  0x12   :  { %155 = vmatpush.xpose.msk.msra.mxu0 %vm37_vm0, %v28_v4  ;;  %173 = vmatpush.xpose.msk.msra.mxu1 %vm37_vm0, %v28_v4 }
  0x16   :  { %156 = vmatpush.xpose.msk.msra.mxu0 %vm37_vm0, %v27_v5  ;;  %174 = vmatpush.xpose.msk.msra.mxu1 %vm37_vm0, %v27_v5 }
  0x1a   :  { %157 = vmatpush.xpose.msk.msra.mxu0 %vm37_vm0, %v26_v6  ;;  %175 = vmatpush.xpose.msk.msra.mxu1 %vm37_vm0, %v26_v6 }
  0x1e   :  { %158 = vmatpush.xpose.msk.msra.mxu0 %vm37_vm0, %v25_v7  ;;  %176 = vmatpush.xpose.msk.msra.mxu1 %vm37_vm0, %v25_v7 }
  0x22   :  { %159 = vmatpush.xpose.msk.msra.mxu0 %vm37_vm0, %v24_v8  ;;  %177 = vmatpush.xpose.msk.msra.mxu1 %vm37_vm0, %v24_v8 }
  0x26   :  { %160 = vmatpush.xpose.msk.msra.mxu0 %vm37_vm0, %v23_v9  ;;  %178 = vmatpush.xpose.msk.msra.mxu1 %vm37_vm0, %v23_v9 }
  0x2a   :  { %161 = vmatpush.xpose.msk.msra.mxu0 %vm37_vm0, %v22_v10  ;;  %179 = vmatpush.xpose.msk.msra.mxu1 %vm37_vm0, %v22_v10 }
  0x2e   :  { %162 = vmatpush.xpose.msk.msra.mxu0 %vm37_vm0, %v21_v11  ;;  %180 = vmatpush.xpose.msk.msra.mxu1 %vm37_vm0, %v21_v11 }
  0x32   :  { %163 = vmatpush.xpose.msk.msra.mxu0 %vm37_vm0, %v20_v12  ;;  %181 = vmatpush.xpose.msk.msra.mxu1 %vm37_vm0, %v20_v12 }
  0x36   :  { %164 = vmatpush.xpose.msk.msra.mxu0 %vm37_vm0, %v19_v13  ;;  %182 = vmatpush.xpose.msk.msra.mxu1 %vm37_vm0, %v19_v13 }
  0x3a   :  { %165 = vmatpush.xpose.msk.msra.mxu0 %vm37_vm0, %v18_v14  ;;  %183 = vmatpush.xpose.msk.msra.mxu1 %vm37_vm0, %v18_v14 }
  0x3e   :  { %166 = vmatpush.xpose.msk.msra.mxu0 %vm37_vm0, %v17_v15  ;;  %184 = vmatpush.xpose.msk.msra.mxu1 %vm37_vm0, %v17_v15 }
  0x41   :  { %167 = vmatmul.msk.f32.vlgmr.msra.gmra.mxu0 %vm37_vm0, %v15_v16  ;;  %168 = vmatmul.msk.f32.vlgmr.msra.gmra.mxu1 %vm37_vm0, %v16_v17 }
  0xbe   :  { %v109_v19 = vpop.f32.mrf.mxu0  ;;  %v112_v20 = vpop.f32.mrf.mxu1 }
  0xbf   :  { %v110_v21 = vadd.f32 %v188_v18, %v109_v19  ;;  %v113_v22 = vadd.f32 %v188_v18, %v112_v20 }
  0xc1   :  { %v115_v23 = vmul.f32 %v110_v21, %v110_v21  ;;  %v116_v24 = vmul.f32 %v113_v22, %v113_v22 }
  0xc3   :  { %v117_v25 = vmul.f32 0.035677407, %v115_v23  ;;  %v118_v26 = vmul.f32 0.035677407, %v116_v24 }
  0xc5   :  { %v119_v27 = vadd.f32 0.7978846, %v117_v25  ;;  %v120_v28 = vadd.f32 0.7978846, %v118_v26 }
  0xc7   :  { %v121_v29 = vmul.f32 %v119_v27, %v110_v21  ;;  %v122_v30 = vmul.f32 %v120_v28, %v113_v22 }
  0xc9   :  { %189 = vtanh.f32 %v121_v29 }
  0xca   :  { %191 = vtanh.f32 %v122_v30 }
  0xcf   :  { %v190_v31 = vpop.eup %189 }
  0xd0   :  { %v192_v32 = vpop.eup %191  ;;  %v125_v33 = vmul.f32 0.5, %v190_v31 }
  0xd1   :  { %v126_v34 = vmul.f32 0.5, %v192_v32 }
  0xd2   :  { %v127_v35 = vadd.f32 0.5, %v125_v33 }
  0xd3   :  { %v128_v36 = vadd.f32 0.5, %v126_v34 }
  0xd4   :  { %v129_v37 = vmul.f32 %v127_v35, %v110_v21 }
  0xd5   :  { %v130_v38 = vmul.f32 %v128_v36, %v113_v22 }
  0xd6   :  { %131 = vst [vmem:[#allocation2] sm:$0xff] %v129_v37 }
  0xd7   :  { %132 = vst [vmem:[#allocation2 + $0x8] sm:$0xff] %v130_v38 }
  0xd8   :  { %145 = dma.vmem_to_hbm [thread:$0]  %s138_s1, 256, %s140_s24, [#allocation3], %s220_s25, %s220_s25, %s221_s26  }
  0xd9   :  { %217 = dma.done.wait [#allocation3], 256  }
  0xda   :  { %218 = vsyncadd [#allocation3], 4294967040 }
  0xdb   :  { %150 = vsyncpa [#allocation3], 1 }

</bundles_post_ra>
